<compile_context>
chip_gen: v7x
topology: tpu7x:2x2x1
jax: 0.10.0
libtpu: 0.0.40
codegen_flags: <defaults>
</compile_context>

<pallas_src>
import functools

import jax
import jax.numpy as jnp
from jax.experimental import pallas as pl
from jax.experimental.pallas import tpu as pltpu


def _policy_kernel(x_ref, w1_ref, b1_ref, w23_ref, b23_ref, out_ref, *, head_pad):
    """One batch tile: hidden layer + fused (mu | sigma_sq) head."""
    x = x_ref[...]                                                # [Bt, num_inputs]

    # hidden layer: relu(x @ W1 + b1), f32 accumulation on the MXU
    h = jnp.dot(x, w1_ref[...], preferred_element_type=jnp.float32) + b1_ref[...]
    h = jnp.maximum(h, 0.0)                                       # [Bt, hidden]

    # fused heads: single matmul producing [Bt, 2*head_pad]
    y = jnp.dot(h, w23_ref[...], preferred_element_type=jnp.float32) + b23_ref[...]

    # lanes [0:head_pad)          -> sigmoid  (mu head, padded)
    # lanes [head_pad:2*head_pad) -> tanh     (sigma_sq head, padded)
    # Both slice boundaries are 128-lane aligned, so these are full-lane stores.
    out_ref[:, :head_pad] = jax.nn.sigmoid(y[:, :head_pad]).astype(out_ref.dtype)
    out_ref[:, head_pad:] = jnp.tanh(y[:, head_pad:]).astype(out_ref.dtype)


def prepare_policy_params(w1, b1, w2, b2, w3, b3):
    """One-time layout transform (hoisted out of the per-step forward).

    Inputs are PyTorch-layout: w*: [out, in], b*: [out].
    Returns weights in [in, out] layout with the two heads concatenated and
    each head padded to a 128-lane-aligned width.
    """
    hidden, num_inputs = w1.shape
    num_outputs = w2.shape[0]
    head_pad = ((num_outputs + 127) // 128) * 128     # per-head padded lane width
    dtype = w1.dtype

    w1_t = jnp.asarray(w1).T                          # [num_inputs, hidden]
    b1_2d = jnp.asarray(b1).reshape(1, hidden)        # [1, hidden]

    w23 = jnp.zeros((hidden, 2 * head_pad), dtype)
    w23 = w23.at[:, :num_outputs].set(jnp.asarray(w2).T)
    w23 = w23.at[:, head_pad:head_pad + num_outputs].set(jnp.asarray(w3).T)

    b23 = jnp.zeros((1, 2 * head_pad), dtype)
    b23 = b23.at[:, :num_outputs].set(jnp.asarray(b2).reshape(1, num_outputs))
    b23 = b23.at[:, head_pad:head_pad + num_outputs].set(
        jnp.asarray(b3).reshape(1, num_outputs))

    return {
        "w1_t": w1_t, "b1": b1_2d, "w23": w23, "b23": b23,
        "num_outputs": num_outputs, "head_pad": head_pad,
    }


def policy_forward(x, params, *, max_batch_tile=512):
    """x: [B, num_inputs]; params: output of prepare_policy_params."""
    w1_t, b1 = params["w1_t"], params["b1"]
    w23, b23 = params["w23"], params["b23"]
    num_outputs, head_pad = params["num_outputs"], params["head_pad"]

    B, num_inputs = x.shape
    hidden = w1_t.shape[1]
    out_w = 2 * head_pad

    # Batch tiling: rows padded to a multiple of 8 (sublane), tile <= max_batch_tile.
    b_pad = ((B + 7) // 8) * 8
    if b_pad <= max_batch_tile:
        bt = b_pad
    else:
        bt = max_batch_tile
        b_pad = ((B + bt - 1) // bt) * bt
    if b_pad != B:
        x = jnp.pad(x, ((0, b_pad - B), (0, 0)))
    grid = (b_pad // bt,)

    kernel = functools.partial(_policy_kernel, head_pad=head_pad)

    out = pl.pallas_call(
        kernel,
        out_shape=jax.ShapeDtypeStruct((b_pad, out_w), x.dtype),
        grid_spec=pltpu.PrefetchScalarGridSpec(
            num_scalar_prefetch=0,
            grid=grid,
            in_specs=[
                pl.BlockSpec((bt, num_inputs), lambda i: (i, 0)),   # x: tiled over batch
                pl.BlockSpec((num_inputs, hidden), lambda i: (0, 0)),  # weights: resident
                pl.BlockSpec((1, hidden), lambda i: (0, 0)),
                pl.BlockSpec((hidden, out_w), lambda i: (0, 0)),
                pl.BlockSpec((1, out_w), lambda i: (0, 0)),
            ],
            out_specs=pl.BlockSpec((bt, out_w), lambda i: (i, 0)),
        ),
        compiler_params=pltpu.CompilerParams(
            dimension_semantics=("parallel",)),
    )(x, w1_t, b1, w23, b23)

    mu = out[:B, :num_outputs]
    sigma_sq = out[:B, head_pad:head_pad + num_outputs]
    return mu, sigma_sq


def init_policy_params(key, hidden_size, num_inputs, num_outputs, dtype=jnp.float32):
    """Deterministic init, PyTorch nn.Linear-style uniform(-1/sqrt(in), 1/sqrt(in))."""
    ks = jax.random.split(key, 6)

    def lin(kw, kb, fan_in, fan_out):
        bound = 1.0 / jnp.sqrt(jnp.asarray(fan_in, dtype))
        w = jax.random.uniform(kw, (fan_out, fan_in), dtype, -bound, bound)
        b = jax.random.uniform(kb, (fan_out,), dtype, -bound, bound)
        return w, b

    w1, b1 = lin(ks[0], ks[1], num_inputs, hidden_size)
    w2, b2 = lin(ks[2], ks[3], hidden_size, num_outputs)
    w3, b3 = lin(ks[4], ks[5], hidden_size, num_outputs)
    return w1, b1, w2, b2, w3, b3


if __name__ == "__main__":
    key = jax.random.PRNGKey(0)
    k_x, k_p = jax.random.split(key)

    batch = 8
    num_inputs = 16
    hidden_size = 32
    num_outputs = 8

    x = jax.random.normal(k_x, (batch, num_inputs), dtype=jnp.float32)
    raw_params = init_policy_params(k_p, hidden_size, num_inputs, num_outputs)

    # One-time layout prep (hoisted out of the per-step forward).
    params = prepare_policy_params(*raw_params)
    jax.block_until_ready(params)

    mu, sigma_sq = policy_forward(x, params)
    jax.block_until_ready((mu, sigma_sq))

    # Reference check (plain JAX) — same math as the PyTorch module.
    w1, b1, w2, b2, w3, b3 = raw_params
    h_ref = jnp.maximum(x @ w1.T + b1, 0.0)
    mu_ref = jax.nn.sigmoid(h_ref @ w2.T + b2)
    sig_ref = jnp.tanh(h_ref @ w3.T + b3)
    assert mu.shape == (batch, num_outputs) and sigma_sq.shape == (batch, num_outputs)
    assert jnp.allclose(mu, mu_ref, atol=1e-5), "mu mismatch"
    assert jnp.allclose(sigma_sq, sig_ref, atol=1e-5), "sigma_sq mismatch"

    print("KERNEL_OK")
</pallas_src>

<mosaic_0001>
module attributes {stable_mosaic.version = 11 : i64} {
  func.func @_policy_kernel(%arg0: i32, %arg1: memref<8x16xf32, #tpu.memory_space<vmem>>, %arg2: memref<16x32xf32, #tpu.memory_space<vmem>>, %arg3: memref<1x32xf32, #tpu.memory_space<vmem>>, %arg4: memref<32x256xf32, #tpu.memory_space<vmem>>, %arg5: memref<1x256xf32, #tpu.memory_space<vmem>>, %arg6: memref<8x256xf32, #tpu.memory_space<vmem>>) attributes {dimension_semantics = [#tpu.dimension_semantics<parallel>], iteration_bounds = array<i64: 1>, scalar_prefetch = 0 : i64, scratch_operands = 0 : i64, tpu.core_type = #tpu.core_type<tc>, window_params = [{transform_indices = @transform_0, window_bounds = array<i64: 8, 16>}, {pipeline_mode = #tpu.pipeline_mode<synchronous>, transform_indices = @transform_1, window_bounds = array<i64: 16, 32>}, {pipeline_mode = #tpu.pipeline_mode<synchronous>, transform_indices = @transform_2, window_bounds = array<i64: 1, 32>}, {pipeline_mode = #tpu.pipeline_mode<synchronous>, transform_indices = @transform_3, window_bounds = array<i64: 32, 256>}, {pipeline_mode = #tpu.pipeline_mode<synchronous>, transform_indices = @transform_4, window_bounds = array<i64: 1, 256>}, {transform_indices = @transform_5, window_bounds = array<i64: 8, 256>}]} {
    %c0 = arith.constant 0 : index
    %c0_0 = arith.constant 0 : index
    %0 = vector.load %arg1[%c0, %c0_0] : memref<8x16xf32, #tpu.memory_space<vmem>>, vector<8x16xf32>
    %c0_1 = arith.constant 0 : index
    %c0_2 = arith.constant 0 : index
    %1 = vector.load %arg2[%c0_1, %c0_2] : memref<16x32xf32, #tpu.memory_space<vmem>>, vector<16x32xf32>
    %cst = arith.constant dense<0.000000e+00> : vector<8x32xf32>
    %2 = tpu.matmul %0, %1, %cst {dimension_numbers = #tpu.dot_dimension_numbers<[1], [0], [0], [1], [0, 0, 1, 1], [], []>} : vector<8x16xf32>, vector<16x32xf32>, vector<8x32xf32> -> vector<8x32xf32>
    %c0_3 = arith.constant 0 : index
    %c0_4 = arith.constant 0 : index
    %3 = vector.load %arg3[%c0_3, %c0_4] : memref<1x32xf32, #tpu.memory_space<vmem>>, vector<1x32xf32>
    %4 = vector.broadcast %3 : vector<1x32xf32> to vector<8x32xf32>
    %5 = arith.addf %2, %4 : vector<8x32xf32>
    %cst_5 = arith.constant 0.000000e+00 : f32
    %6 = vector.broadcast %cst_5 : f32 to vector<8x32xf32>
    %7 = arith.maximumf %5, %6 : vector<8x32xf32>
    %c0_6 = arith.constant 0 : index
    %c0_7 = arith.constant 0 : index
    %8 = vector.load %arg4[%c0_6, %c0_7] : memref<32x256xf32, #tpu.memory_space<vmem>>, vector<32x256xf32>
    %cst_8 = arith.constant dense<0.000000e+00> : vector<8x256xf32>
    %9 = tpu.matmul %7, %8, %cst_8 {dimension_numbers = #tpu.dot_dimension_numbers<[1], [0], [0], [1], [0, 0, 1, 1], [], []>} : vector<8x32xf32>, vector<32x256xf32>, vector<8x256xf32> -> vector<8x256xf32>
    %c0_9 = arith.constant 0 : index
    %c0_10 = arith.constant 0 : index
    %10 = vector.load %arg5[%c0_9, %c0_10] : memref<1x256xf32, #tpu.memory_space<vmem>>, vector<1x256xf32>
    %11 = vector.broadcast %10 : vector<1x256xf32> to vector<8x256xf32>
    %12 = arith.addf %9, %11 : vector<8x256xf32>
    %13 = vector.extract_strided_slice %12 {offsets = [0, 0], sizes = [8, 128], strides = [1, 1]} : vector<8x256xf32> to vector<8x128xf32>
    %14 = arith.negf %13 : vector<8x128xf32>
    %15 = math.exp %14 : vector<8x128xf32>
    %cst_11 = arith.constant 1.000000e+00 : f32
    %16 = vector.broadcast %cst_11 : f32 to vector<8x128xf32>
    %17 = arith.addf %16, %15 : vector<8x128xf32>
    %18 = arith.divf %16, %17 : vector<8x128xf32>
    %c0_12 = arith.constant 0 : index
    %c0_13 = arith.constant 0 : index
    %19 = vector.load %arg6[%c0_12, %c0_13] : memref<8x256xf32, #tpu.memory_space<vmem>>, vector<8x128xf32>
    tpu.vector_store %arg6[%c0_12, %c0_13], %18 {strides = array<i32>} : memref<8x256xf32, #tpu.memory_space<vmem>>, vector<8x128xf32>,
    %20 = vector.extract_strided_slice %12 {offsets = [0, 128], sizes = [8, 128], strides = [1, 1]} : vector<8x256xf32> to vector<8x128xf32>
    %21 = math.tanh %20 : vector<8x128xf32>
    %c0_14 = arith.constant 0 : index
    %c128 = arith.constant 128 : index
    %22 = vector.load %arg6[%c0_14, %c128] : memref<8x256xf32, #tpu.memory_space<vmem>>, vector<8x128xf32>
    tpu.vector_store %arg6[%c0_14, %c128], %21 {strides = array<i32>} : memref<8x256xf32, #tpu.memory_space<vmem>>, vector<8x128xf32>,
    return
  }
  func.func @transform_0(%arg0: i32) -> (i32, i32) {
    %c0_i32 = arith.constant 0 : i32
    %c0_i32_0 = arith.constant 0 : i32
    return %arg0, %c0_i32 : i32, i32
  }
  func.func @transform_1(%arg0: i32) -> (i32, i32) {
    %c0_i32 = arith.constant 0 : i32
    %c0_i32_0 = arith.constant 0 : i32
    %c0_i32_1 = arith.constant 0 : i32
    return %c0_i32, %c0_i32_0 : i32, i32
  }
  func.func @transform_2(%arg0: i32) -> (i32, i32) {
    %c0_i32 = arith.constant 0 : i32
    %c0_i32_0 = arith.constant 0 : i32
    %c0_i32_1 = arith.constant 0 : i32
    return %c0_i32, %c0_i32_0 : i32, i32
  }
  func.func @transform_3(%arg0: i32) -> (i32, i32) {
    %c0_i32 = arith.constant 0 : i32
    %c0_i32_0 = arith.constant 0 : i32
    %c0_i32_1 = arith.constant 0 : i32
    return %c0_i32, %c0_i32_0 : i32, i32
  }
  func.func @transform_4(%arg0: i32) -> (i32, i32) {
    %c0_i32 = arith.constant 0 : i32
    %c0_i32_0 = arith.constant 0 : i32
    %c0_i32_1 = arith.constant 0 : i32
    return %c0_i32, %c0_i32_0 : i32, i32
  }
  func.func @transform_5(%arg0: i32) -> (i32, i32) {
    %c0_i32 = arith.constant 0 : i32
    %c0_i32_0 = arith.constant 0 : i32
    return %arg0, %c0_i32 : i32, i32
  }
}

</mosaic_0001>

<bundles_post_ra>
// kernel: tpu_custom_call.1
= control target key start
LH: loop header
LB: loop body
LE: loop exit
PB: predicated region body
PF: predicated region fallthrough
CT: control target
= control target key end

     0   :  { %10 = vsyncpa [#allocation3], 0  ;;  %s496_s0 = inlined_call_operand.hbm [shape: f32[8,16], index: 0, kind: input, shape index: {}]   ;;  %s497_s1 = inlined_call_operand.hbm [shape: f32[16,32], index: 1, kind: input, shape index: {}]   ;;  %s498_s2 = inlined_call_operand.vmem [shape: f32[1,32], index: 2, kind: input, shape index: {}]   ;;  %s499_s3 = inlined_call_operand.hbm [shape: f32[32,256], index: 3, kind: input, shape index: {}]   ;;  %s500_s4 = inlined_call_operand.vmem [shape: f32[1,256], index: 4, kind: input, shape index: {}]   ;;  %s501_s5 = inlined_call_operand.hbm [shape: f32[8,256], index: 5, kind: output, shape index: {}]  }
   0x1   :  { %11 = vsyncpa [#allocation6], 0 }
   0x2   :  { %12 = vsyncpa [#allocation4], 0  ;;  %s401_s18 = smov [#allocation5]   ;;  %s307_s22 = scalar_lea.hbm %s497_s1, 256 }
   0x3   :  { %s28_s19 = sshll.u32 %s401_s18, 4  ;;  %p308_p0 = scmp.ne.s32.totalorder %s497_s1, %s307_s22  ;;  %s29_s19 = int_to_ptr.vmem [resolvable:$true] %s28_s19 }
   0x4   :  { %p311_p1 = scmp.lt.u32.totalorder %s307_s22, %s497_s1 }
   0x6   :  { %p313_p2 = pnand %p311_p1, %p308_p0 }
   0x8   :  { %316 = shalt.err (!%p313_p2)
}
   0x9   :  { %s317_s27 = scalar_lea.vmem %s29_s19, 256  ;;  %p322_p4 = scmp.lt.s32.totalorder %s29_s19, %s29_s19 }
   0xa   :  { %p318_p3 = scmp.ne.s32.totalorder %s29_s19, %s317_s27  ;;  %p323_p5 = scmp.lt.s32.totalorder %s317_s27, %s317_s27 }
   0xc   :  { %p324_p6 = por %p323_p5, %p322_p4 }
   0xe   :  { %p325_p7 = pnand %p324_p6, %p318_p3 }
  0x10   :  { %328 = shalt.err (!%p325_p7)
}
  0x11   :  { %s402_s28 = smov 128   ;;  %s403_s29 = smov 8  }
  0x12   :  { %34 = dma.hbm_to_vmem [thread:$0]  %s497_s1, 256, %s29_s19, [#allocation6], %s402_s28, %s402_s28, %s403_s29  }
  0x13   :  { %s404_s7 = smov [#allocation2]   ;;  %s405_s9 = smov [#allocation7]  }
  0x14   :  { %s19_s8 = sshll.u32 %s404_s7, 4  ;;  %s42_s10 = sshll.u32 %s405_s9, 4  ;;  %s20_s8 = int_to_ptr.vmem [resolvable:$true] %s19_s8  ;;  %s43_s10 = int_to_ptr.vmem [resolvable:$true] %s42_s10 }
  0x15   :  { %s329_s13 = scalar_lea.hbm %s496_s0, 128 }
  0x16   :  { %p330_p8 = scmp.ne.s32.totalorder %s496_s0, %s329_s13  ;;  %p333_p9 = scmp.lt.u32.totalorder %s329_s13, %s496_s0 }
  0x18   :  { %p335_p10 = pnand %p333_p9, %p330_p8 }
  0x1a   :  { %338 = shalt.err (!%p335_p10)
}
  0x1b   :  { %s339_s1 = scalar_lea.vmem %s20_s8, 128  ;;  %p344_p12 = scmp.lt.s32.totalorder %s20_s8, %s20_s8 }
  0x1c   :  { %p340_p11 = scmp.ne.s32.totalorder %s20_s8, %s339_s1  ;;  %p345_p13 = scmp.lt.s32.totalorder %s339_s1, %s339_s1 }
  0x1e   :  { %p346_p0 = por %p345_p13, %p344_p12 }
  0x20   :  { %p347_p1 = pnand %p346_p0, %p340_p11 }
  0x22   :  { %350 = shalt.err (!%p347_p1)
}
  0x23   :  { %22 = dma.hbm_to_vmem [thread:$0]  %s496_s0, 128, %s20_s8, [#allocation3]  }
  0x24   :  { %s351_s22 = scalar_lea.hbm %s499_s3, 1024 }
  0x25   :  { %p352_p2 = scmp.ne.s32.totalorder %s499_s3, %s351_s22  ;;  %p355_p3 = scmp.lt.u32.totalorder %s351_s22, %s499_s3 }
  0x27   :  { %p357_p4 = pnand %p355_p3, %p352_p2 }
  0x29   :  { %360 = shalt.err (!%p357_p4)
}
  0x2a   :  { %s361_s27 = scalar_lea.vmem %s43_s10, 1024  ;;  %p366_p6 = scmp.lt.s32.totalorder %s43_s10, %s43_s10 }
  0x2b   :  { %p362_p5 = scmp.ne.s32.totalorder %s43_s10, %s361_s27  ;;  %p367_p7 = scmp.lt.s32.totalorder %s361_s27, %s361_s27 }
  0x2d   :  { %p368_p8 = por %p367_p7, %p366_p6 }
  0x2f   :  { %p369_p9 = pnand %p368_p8, %p362_p5 }
  0x31   :  { %372 = shalt.err (!%p369_p9)
}
  0x32   :  { %s406_s0 = smov 256   ;;  %s407_s28 = smov 16  }
  0x33   :  { %48 = dma.hbm_to_vmem [thread:$0]  %s499_s3, 1024, %s43_s10, [#allocation6], %s406_s0, %s406_s0, %s407_s28  }
  0x34   :  { %395 = dma.done.wait [#allocation3], 128  }
  0x35   :  { %396 = vsyncadd [#allocation3], 4294967168 }
  0x36   :  { %397 = dma.done.wait [#allocation6], 1280  }
  0x37   :  { %398 = vsyncadd [#allocation6], 4294966016  ;;  %v408_v0 = vmov 0.0|0.0   ;;  %vm409_vm0 = vmmov 0   ;;  %v410_v1 = vmov 0.0   ;;  %v61_v2 = vld [vmem:[#allocation5] sm:$0xff]  ;;  %v155_v23 = vlaneseq }
  0x38   :  { %279 = vmatprep.subr.bf16.mxu0 %v408_v0  ;;  %276 = vmatprep.mubr.msk.f32.mxu0 %vm409_vm0, %v410_v1  ;;  %v62_v3 = vld [vmem:[#allocation5 + $0x8] sm:$0xff]  ;;  %v146_v5 = vld [vmem:[#allocation7 + $0x8] sm:$0xff]  ;;  %v145_v7 = vld [vmem:[#allocation7] sm:$0xff]  ;;  %vm70_vm1 = vcmask 130048   ;;  %vm165_vm2 = vcmask 261120  }
  0x39   :  { %233 = vmatprep.mubr.f32.mxu1 %v410_v1  ;;  %v280_v4 = vpack.c.bf16 %v62_v3, %v61_v2  ;;  %v148_v6 = vld [vmem:[#allocation7 + $0x18] sm:$0xff]  ;;  %v147_v9 = vld [vmem:[#allocation7 + $0x10] sm:$0xff]  ;;  %v60_v10 = vld [vmem:[#allocation2] sm:$0xff]  ;;  %v156_v24 = vshrl.u32 %v155_v23, 7 }
  0x3a   :  { %v282_v8 = vpack.c.bf16 %v148_v6, %v146_v5  ;;  %v284_v11 = vpack.c.bf16 %v147_v9, %v145_v7  ;;  %v150_v12 = vld [vmem:[#allocation7 + $0x28] sm:$0xff]  ;;  %v152_v13 = vld [vmem:[#allocation7 + $0x38] sm:$0xff]  ;;  %v149_v15 = vld [vmem:[#allocation7 + $0x20] sm:$0xff] }
  0x3b   :  { %281 = vmatpush3.bf16.msra.mxu0 %v280_v4  ;;  %v286_v14 = vpack.c.bf16 %v152_v13, %v150_v12  ;;  %v151_v16 = vld [vmem:[#allocation7 + $0x30] sm:$0xff]  ;;  %v265_v18 = vld [vmem:[%s498_s2] ss:$0 sm:$0xff]  ;;  %v157_v25 = vsub.s32 0, %v156_v24  ;;  %v161_v27 = vsub.s32 1, %v156_v24  ;;  %s411_s2 = smov [#allocation8]  }
  0x3c   :  { %283 = vmatprep.subr.bf16.mxu1 %v282_v8  ;;  %v288_v17 = vpack.c.bf16 %v151_v16, %v149_v15  ;;  %v153_v26 = vld [vmem:[%s500_s4] sm:$0x3]  ;;  %s255_s9 = sshll.u32 %s411_s2, 4  ;;  %s256_s9 = int_to_ptr.vmem [resolvable:$true] %s255_s9 }
  0x3d   :  { %285 = vmatpush1.bf16.msra.mxu1 %v284_v11  ;;  %v158_v28 = vrot.slane %v153_v26, %v157_v25  ;;  %v162_v29 = vrot.slane %v153_v26, %v161_v27  ;;  %s373_s4 = scalar_lea.vmem %s256_s9, 256  ;;  %p378_p11 = scmp.lt.s32.totalorder %s256_s9, %s256_s9 }
  0x3e   :  { %277 = vmatmul.mubr.msk.f32.vlgmr.msra.gmra.mrb[0].mxu0 %vm70_vm1, %v60_v10  ;;  %287 = vmatprep.subr.bf16.mxu1 %v286_v14  ;;  %p374_p10 = scmp.ne.s32.totalorder %s256_s9, %s373_s4  ;;  %p379_p12 = scmp.lt.s32.totalorder %s373_s4, %s373_s4 }
  0x40   :  { %p380_p13 = por %p379_p12, %p378_p11 }
  0x41   :  { %289 = vmatpush1.bf16.msra.mxu1 %v288_v17 }
  0x42   :  { %p381_p0 = pnand %p380_p13, %p374_p10 }
 0x111   :  { %v140_v19 = vpop.f32.mrb[0].mxu0 }
 0x112   :  { %v141_v20 = vadd.f32 %v265_v18, %v140_v19  ;;  %v278_v21 = vpop.f32.mrb[1].mxu0 }
 0x114   :  { %v144_v22 = vmax.f32 %v141_v20, 0.0 }
 0x116   :  { %267 = vmatmul.mubr.msk.f32.vlgmr.msra.gmra.mrb[0].mxu1 %vm165_vm2, %v144_v22 }
 0x1e9   :  { %v235_v30 = vpop.f32.mrb[0].mxu1 }
 0x1ea   :  { %v236_v31 = vadd.f32 %v235_v30, %v158_v28  ;;  %v237_v32 = vpop.f32.mrb[1].mxu1 }
 0x1eb   :  { %v238_v33 = vadd.f32 %v237_v32, %v162_v29 }
 0x1ec   :  { %v268_v34 = vmul.f32 -1.442695, %v236_v31 }
 0x1ed   :  { %301 = vtanh.f32 %v238_v33 }
 0x1ee   :  { %303 = vpow2.f32 %v268_v34 }
 0x1f7   :  { %v302_v35 = vpop.eup %301 }
 0x1f8   :  { %v304_v36 = vpop.eup %303  ;;  %248 = vst [vmem:[#allocation8 + $0x8] sm:$0xff] %v302_v35 }
 0x1f9   :  { %v243_v37 = vadd.f32 1.0, %v304_v36 }
 0x1fb   :  { %305 = vrcp.f32 %v243_v37 }
 0x205   :  { %v306_v38 = vpop.eup %305 }
 0x206   :  { %246 = vst [vmem:[#allocation8] sm:$0xff] %v306_v38 }
 0x207   :  { %384 = shalt.err (!%p381_p0)
}
 0x208   :  { %s385_s12 = scalar_lea.hbm %s501_s5, 256 }
 0x209   :  { %p386_p1 = scmp.ne.s32.totalorder %s501_s5, %s385_s12  ;;  %p389_p2 = scmp.lt.u32.totalorder %s385_s12, %s501_s5 }
 0x20b   :  { %p391_p3 = pnand %p389_p2, %p386_p1 }
 0x20d   :  { %394 = shalt.err (!%p391_p3)
}
 0x20e   :  { %258 = dma.vmem_to_hbm [thread:$0]  %s256_s9, 256, %s501_s5, [#allocation4]  }
 0x20f   :  { %399 = dma.done.wait [#allocation4], 256  }
 0x210   :  { %400 = vsyncadd [#allocation4], 4294967040 }
 0x211   :  { %262 = vsyncpa [#allocation3], 1 }
 0x212   :  { %263 = vsyncpa [#allocation6], 1 }
 0x213   :  { %264 = vsyncpa [#allocation4], 1 }

</bundles_post_ra>
